<compile_context>
chip_gen: v6e
topology: v6e:2x2x1
jax: 0.10.0
libtpu: 0.0.40
codegen_flags: <defaults>
</compile_context>

<pallas_src>
import functools

import jax
import jax.numpy as jnp
from jax.experimental import pallas as pl
from jax.experimental.pallas import tpu as pltpu

LN_EPS = 1e-5  # PyTorch F.layer_norm default


def _linproj_kernel(x_ref, w_ref, b_ref, o_ref):
    # ---- LayerNorm over the feature axis: fused single-pass stats (f32) ----
    x = x_ref[...].astype(jnp.float32)                  # (bm, Din)
    inv_n = jnp.float32(1.0 / x.shape[-1])
    s1 = jnp.sum(x, axis=-1, keepdims=True)             # sum(x)
    s2 = jnp.sum(x * x, axis=-1, keepdims=True)         # sum(x^2)
    mean = s1 * inv_n
    var = jnp.maximum(s2 * inv_n - mean * mean, 0.0)    # E[x^2] - E[x]^2
    x_norm = (x - mean) * jax.lax.rsqrt(var + LN_EPS)

    # ---- Linear: bf16 MXU matmul, f32 accumulation, f32 bias add ----
    y = jnp.dot(x_norm.astype(jnp.bfloat16), w_ref[...],
                preferred_element_type=jnp.float32)      # (bm, bn)
    y = y + b_ref[...].astype(jnp.float32)               # (1, bn) broadcast
    o_ref[...] = y.astype(o_ref.dtype)


def _fit_block(dim, target, unit):
    """Largest legal block <= target for an axis of length `dim`:
    either the full axis, or a multiple of `unit` (TPU tile granularity)."""
    if dim <= target:
        return dim
    return max(unit, (target // unit) * unit)


@functools.partial(jax.jit, static_argnames=("block_b", "block_n"))
def linear_projection(x, w_t, bias, *, block_b=256, block_n=512):
    """x: (B, Din) f32/bf16, w_t: (Din, Dout), bias: (Dout,) -> (B, Dout)."""
    B, Din = x.shape
    Dout = w_t.shape[1]

    # Ship the weight as bf16: halves weight HBM traffic + VMEM footprint;
    # accumulation stays f32 so accuracy loss is negligible.
    w_bf16 = w_t.astype(jnp.bfloat16)
    bias2d = bias.astype(jnp.float32).reshape(1, Dout)

    sublane = max(1, 32 // x.dtype.itemsize)        # 8 for f32, 16 for bf16
    bm = _fit_block(B, block_b, sublane)            # batch (M) tile
    bn = _fit_block(Dout, block_n, 128)             # output (N) tile, lane-dense

    # Grid: N-tiles outer, batch inner -> each weight N-tile is fetched from
    # HBM exactly once (x tile block index is constant across the inner axis,
    # so Pallas does not re-DMA it between consecutive steps either).
    grid = (pl.cdiv(Dout, bn), pl.cdiv(B, bm))

    cost = pl.CostEstimate(
        flops=2 * B * Din * Dout,
        transcendentals=B,                          # one rsqrt per row
        bytes_accessed=(x.size * x.dtype.itemsize
                        + w_bf16.size * 2
                        + bias2d.size * 4
                        + B * Dout * x.dtype.itemsize),
    )

    # Explicit VMEM budget: double-buffered x / W / bias / out tiles + headroom.
    vmem_needed = 2 * (bm * Din * x.dtype.itemsize        # x tile
                       + Din * bn * 2                     # bf16 weight tile
                       + bn * 4                           # bias tile
                       + bm * bn * x.dtype.itemsize)      # out tile
    vmem_limit = int(min(max(2 * vmem_needed, 16 << 20), 48 << 20))

    return pl.pallas_call(
        _linproj_kernel,
        out_shape=jax.ShapeDtypeStruct((B, Dout), x.dtype),
        grid_spec=pltpu.PrefetchScalarGridSpec(
            num_scalar_prefetch=0,
            grid=grid,
            in_specs=[
                pl.BlockSpec((bm, Din), lambda j, i: (i, 0)),   # x
                pl.BlockSpec((Din, bn), lambda j, i: (0, j)),   # W (bf16)
                pl.BlockSpec((1, bn), lambda j, i: (0, j)),     # bias
            ],
            out_specs=pl.BlockSpec((bm, bn), lambda j, i: (i, j)),
        ),
        compiler_params=pltpu.CompilerParams(
            dimension_semantics=("parallel", "parallel"),
            vmem_limit_bytes=vmem_limit,
        ),
        cost_estimate=cost,
    )(x, w_bf16, bias2d)


def init_params(key, input_dim, output_dim):
    """Matches nn.Linear + xavier_uniform_(weight), zeros_(bias)."""
    # PyTorch weight shape is (output_dim, input_dim); xavier bound uses
    # fan_in=input_dim, fan_out=output_dim.
    bound = (6.0 / (input_dim + output_dim)) ** 0.5
    w = jax.random.uniform(
        key, (output_dim, input_dim), dtype=jnp.float32,
        minval=-bound, maxval=bound,
    )
    w_t = jnp.transpose(w)                      # (input_dim, output_dim)
    b = jnp.zeros((output_dim,), dtype=jnp.float32)
    return w_t, b


if __name__ == "__main__":
    # Small deterministic test shapes; block sizes chosen to exercise a
    # 2x2 grid (both batch tiling and output-dim tiling).
    B, INPUT_DIM, OUTPUT_DIM = 16, 128, 256

    key = jax.random.PRNGKey(0)
    kx, kw = jax.random.split(key)
    x = jax.random.normal(kx, (B, INPUT_DIM), dtype=jnp.float32)
    w_t, bias = init_params(kw, INPUT_DIM, OUTPUT_DIM)

    out = linear_projection(x, w_t, bias, block_b=8, block_n=128)
    jax.block_until_ready(out)

    # Pure-JAX f32 reference (same semantics as the PyTorch forward).
    mean = jnp.mean(x, axis=-1, keepdims=True)
    var = jnp.mean((x - mean) ** 2, axis=-1, keepdims=True)
    x_norm = (x - mean) / jnp.sqrt(var + LN_EPS)
    ref = x_norm @ w_t + bias
    # bf16 matmul operands -> loose-ish tolerance vs the f32 reference.
    assert jnp.allclose(out, ref, atol=2e-2, rtol=2e-2), "mismatch vs reference"

    print("KERNEL_OK")
</pallas_src>

<mosaic_0001>
module attributes {stable_mosaic.version = 11 : i64} {
  func.func @_linproj_kernel(%arg0: i32, %arg1: i32, %arg2: memref<8x128xf32, #tpu.memory_space<vmem>>, %arg3: memref<128x128xbf16, #tpu.memory_space<vmem>>, %arg4: memref<1x128xf32, #tpu.memory_space<vmem>>, %arg5: memref<8x128xf32, #tpu.memory_space<vmem>>) attributes {dimension_semantics = [#tpu.dimension_semantics<parallel>, #tpu.dimension_semantics<parallel>], iteration_bounds = array<i64: 2, 2>, scalar_prefetch = 0 : i64, scratch_operands = 0 : i64, tpu.core_type = #tpu.core_type<tc>, window_params = [{transform_indices = @transform_0, window_bounds = array<i64: 8, 128>}, {transform_indices = @transform_1, window_bounds = array<i64: 128, 128>}, {transform_indices = @transform_2, window_bounds = array<i64: 1, 128>}, {transform_indices = @transform_3, window_bounds = array<i64: 8, 128>}]} {
    %c0 = arith.constant 0 : index
    %c0_0 = arith.constant 0 : index
    %0 = vector.load %arg2[%c0, %c0_0] : memref<8x128xf32, #tpu.memory_space<vmem>>, vector<8x128xf32>
    %cst = arith.constant dense<0.000000e+00> : vector<8xf32>
    %1 = vector.multi_reduction <add>, %0, %cst [1] : vector<8x128xf32> to vector<8xf32>
    %2 = vector.shape_cast %1 : vector<8xf32> to vector<8x1xf32>
    %3 = arith.mulf %0, %0 : vector<8x128xf32>
    %cst_1 = arith.constant dense<0.000000e+00> : vector<8xf32>
    %4 = vector.multi_reduction <add>, %3, %cst_1 [1] : vector<8x128xf32> to vector<8xf32>
    %5 = vector.shape_cast %4 : vector<8xf32> to vector<8x1xf32>
    %cst_2 = arith.constant 7.812500e-03 : f32
    %6 = vector.broadcast %cst_2 : f32 to vector<8x1xf32>
    %7 = arith.mulf %2, %6 : vector<8x1xf32>
    %cst_3 = arith.constant 7.812500e-03 : f32
    %8 = vector.broadcast %cst_3 : f32 to vector<8x1xf32>
    %9 = arith.mulf %5, %8 : vector<8x1xf32>
    %10 = arith.mulf %7, %7 : vector<8x1xf32>
    %11 = arith.subf %9, %10 : vector<8x1xf32>
    %cst_4 = arith.constant 0.000000e+00 : f32
    %12 = vector.broadcast %cst_4 : f32 to vector<8x1xf32>
    %13 = arith.maximumf %11, %12 : vector<8x1xf32>
    %14 = vector.broadcast %7 : vector<8x1xf32> to vector<8x128xf32>
    %15 = arith.subf %0, %14 : vector<8x128xf32>
    %cst_5 = arith.constant 9.99999974E-6 : f32
    %16 = vector.broadcast %cst_5 : f32 to vector<8x1xf32>
    %17 = arith.addf %13, %16 : vector<8x1xf32>
    %18 = math.rsqrt %17 : vector<8x1xf32>
    %19 = vector.broadcast %18 : vector<8x1xf32> to vector<8x128xf32>
    %20 = arith.mulf %15, %19 : vector<8x128xf32>
    %21 = arith.truncf %20 : vector<8x128xf32> to vector<8x128xbf16>
    %c0_6 = arith.constant 0 : index
    %c0_7 = arith.constant 0 : index
    %22 = vector.load %arg3[%c0_6, %c0_7] : memref<128x128xbf16, #tpu.memory_space<vmem>>, vector<128x128xbf16>
    %cst_8 = arith.constant dense<0.000000e+00> : vector<8x128xf32>
    %23 = tpu.matmul %21, %22, %cst_8 {dimension_numbers = #tpu.dot_dimension_numbers<[1], [0], [0], [1], [0, 0, 1, 1], [], []>} : vector<8x128xbf16>, vector<128x128xbf16>, vector<8x128xf32> -> vector<8x128xf32>
    %c0_9 = arith.constant 0 : index
    %c0_10 = arith.constant 0 : index
    %24 = vector.load %arg4[%c0_9, %c0_10] : memref<1x128xf32, #tpu.memory_space<vmem>>, vector<1x128xf32>
    %25 = vector.broadcast %24 : vector<1x128xf32> to vector<8x128xf32>
    %26 = arith.addf %23, %25 : vector<8x128xf32>
    %c0_11 = arith.constant 0 : index
    %c0_12 = arith.constant 0 : index
    %27 = vector.load %arg5[%c0_11, %c0_12] : memref<8x128xf32, #tpu.memory_space<vmem>>, vector<8x128xf32>
    tpu.vector_store %arg5[%c0_11, %c0_12], %26 {strides = array<i32>} : memref<8x128xf32, #tpu.memory_space<vmem>>, vector<8x128xf32>,
    return
  }
  func.func @transform_0(%arg0: i32, %arg1: i32) -> (i32, i32) {
    %c0_i32 = arith.constant 0 : i32
    %c0_i32_0 = arith.constant 0 : i32
    return %arg1, %c0_i32 : i32, i32
  }
  func.func @transform_1(%arg0: i32, %arg1: i32) -> (i32, i32) {
    %c0_i32 = arith.constant 0 : i32
    %c0_i32_0 = arith.constant 0 : i32
    return %c0_i32, %arg0 : i32, i32
  }
  func.func @transform_2(%arg0: i32, %arg1: i32) -> (i32, i32) {
    %c0_i32 = arith.constant 0 : i32
    %c0_i32_0 = arith.constant 0 : i32
    return %c0_i32, %arg0 : i32, i32
  }
  func.func @transform_3(%arg0: i32, %arg1: i32) -> (i32, i32) {
    %c0_i32 = arith.constant 0 : i32
    return %arg1, %arg0 : i32, i32
  }
}

</mosaic_0001>

<bundles_post_ra>
// kernel: linear_projection.1
= control target key start
LH: loop header
LB: loop body
LE: loop exit
PB: predicated region body
PF: predicated region fallthrough
CT: control target
= control target key end

     0   :  { %s1039_s0 = inlined_call_operand.vmem [shape: f32[16,128], index: 0, kind: input, shape index: {}]   ;;  %s1040_s1 = inlined_call_operand.vmem [shape: bf16[128,256], index: 1, kind: input, shape index: {}]   ;;  %s1041_s2 = inlined_call_operand.vmem [shape: f32[1,256], index: 2, kind: input, shape index: {}]   ;;  %s1042_s3 = inlined_call_operand.hbm [shape: f32[16,256], index: 3, kind: output, shape index: {}]  }
   0x1   :  { %1043 = sst [smem:[#allocation6_spill]] %s1039_s0 }
   0x2   :  { %1044 = sst [smem:[#allocation7_spill]] %s1040_s1 }
   0x3   :  { %8 = vsyncpa [#allocation4], 0 }
   0x4   :  { %10 = vsyncpa [#allocation4 + $0x1], 0  ;;  %s846_s12 = smov 0   ;;  %s848_s13 = smov 0  }
   0x5   :  { %s850_s14 = smov 0   ;;  %s852_s15 = smov 0  }
   0x6   :  { %s854_s16 = smov 0   ;;  %s856_s17 = smov 0  }
   0x7   :  { %s858_s18 = smov 0   ;;  %s860_s19 = smov 0  }
   0x8   :  { %s862_s20 = smov 0   ;;  %s864_s21 = smov 0  }
   0x9 LB: > { %s561_s22 = sadd.s32 4294967295, %s821_s21   ;;  %s562_s23 = sadd.s32 4294967294, %s821_s21   ;;  %s821_s21 = sphi %s864_s21, %s16_s21   ;;  %s817_s20 = sphi %s862_s20, %s1058_s20   ;;  %s813_s19 = sphi %s860_s19, %s1057_s19   ;;  %s809_s18 = sphi %s858_s18, %s1056_s18   ;;  %s805_s17 = sphi %s856_s17, %s1055_s17   ;;  %s801_s16 = sphi %s854_s16, %s1054_s16   ;;  %s797_s15 = sphi %s852_s15, %s1053_s15   ;;  %s793_s14 = sphi %s850_s14, %s1052_s14   ;;  %s789_s13 = sphi %s848_s13, %s1051_s13   ;;  %s785_s12 = sphi %s846_s12, %s1050_s12  }
   0xa   : > { %s25_s24 = sadd.s32 1, %s813_s19  ;;  %s28_s25 = sadd.s32 1, %s817_s20 }
   0xb   : > { %p26_p0 = scmp.ge.s32.totalorder %s25_s24, 2  ;;  %s61_s26 = sadd.s32 1, %s801_s16 }
   0xc   : > { %p68_p1 = scmp.ne.s32.totalorder %s801_s16, %s797_s15  ;;  %p69_p2 = scmp.eq.s32.totalorder %s821_s21, 0 }
   0xd   : > { %s1060_s24 = smov (%p26_p0, %s25_s24), 0  ;;  %s1062_s25 = smov (!%p26_p0, %s28_s25), %s817_s20 }
   0xe   : > { %p907_p3 = por %p69_p2, %p68_p1  ;;  %s110_s28 = ssub.s32 %s813_s19, %s1060_s24 }
   0xf   : > { %p30_p4 = scmp.ge.s32.totalorder %s1062_s25, 2  ;;  %s115_s29 = sadd.s32 1, %s793_s14 }
  0x10   : > { %p125_p5 = scmp.ne.s32.totalorder %s793_s14, %s789_s13  ;;  %p126_p6 = scmp.eq.s32.totalorder %s561_s22, 3 }
  0x11   : > { %s1064_s25 = smov (%p30_p4, %s1062_s25), 0  ;;  %p131_p8 = scmp.ne.s32.totalorder %s789_s13, %s785_s12 }
  0x12   : > { %p918_p7 = por %p126_p6, %p125_p5  ;;  %s58_s4 = ssub.s32 %s817_s20, %s1064_s25 }
  0x13   : > { %p132_p9 = scmp.eq.s32.totalorder %s562_s23, 3  ;;  %p59_p10 = scmp.eq.s32.totalorder %s58_s4, 0 }
  0x14   : > { %s112_s5 = sor.u32 %s110_s28, %s58_s4  ;;  %p564_p13 = scmp.ge.s32.totalorder %s821_s21, 4 }
  0x15   : > { %p113_p11 = scmp.eq.s32.totalorder %s112_s5, 0  ;;  %p926_p12 = por %p132_p9, %p131_p8 }
  0x16   : > { %s931_s7 = scalar_select %p59_p10, %s801_s16, %s61_s26  }
  0x17   : > { %s934_s8 = scalar_select %p113_p11, %s793_s14, %s115_s29  }
  0x18   : > { %148 = sbr.rel (%p564_p13) target bundleno = 49 (0x31), region = 16 }
  0x1d   : > { %158 = sbr.rel (!%p907_p3) target bundleno = 49 (0x31), region = 24  ;;  %s160_s9 = sand.u32 (%p907_p3), 1, %s801_s16  }
  0x1e   : > { %s566_s10 = sshll.u32 (%p907_p3), %s817_s20, 2  ;;  %s565_s11 = sshll.u32 (%p907_p3), %s160_s9, 6 }
  0x1f   : > { %s1048_s1 = sld [smem:[#allocation7_spill]] (%p907_p3)  ;;  %s162_s26 = scalar_lea.vmem (%p907_p3), [#allocation2], %s565_s11 }
  0x25   : > { %s944_s28 = scalar_lea.vmem %s1048_s1, %s566_s10 }
  0x26   : > { %v181_v0 = vld [vmem:[%s944_s28] sm:$0xf]  ;;  %v183_v1 = vld [vmem:[%s944_s28 + $0x8] sm:$0xf]  ;;  %v185_v2 = vld [vmem:[%s944_s28 + $0x10] sm:$0xf] }
  0x27   : > { %182 = vst [vmem:[%s162_s26] sm:$0xf] %v181_v0  ;;  %184 = vst [vmem:[%s162_s26 + $0x4] sm:$0xf] %v183_v1  ;;  %v187_v3 = vld [vmem:[%s944_s28 + $0x18] sm:$0xf] }
  0x28   : > { %v189_v4 = vld [vmem:[%s944_s28 + $0x20] sm:$0xf]  ;;  %186 = vst [vmem:[%s162_s26 + $0x8] sm:$0xf] %v185_v2  ;;  %188 = vst [vmem:[%s162_s26 + $0xc] sm:$0xf] %v187_v3 }
  0x29   : > { %190 = vst [vmem:[%s162_s26 + $0x10] sm:$0xf] %v189_v4  ;;  %v191_v5 = vld [vmem:[%s944_s28 + $0x28] sm:$0xf]  ;;  %v193_v6 = vld [vmem:[%s944_s28 + $0x30] sm:$0xf] }
  0x2a   : > { %v195_v7 = vld [vmem:[%s944_s28 + $0x38] sm:$0xf]  ;;  %192 = vst [vmem:[%s162_s26 + $0x14] sm:$0xf] %v191_v5  ;;  %194 = vst [vmem:[%s162_s26 + $0x18] sm:$0xf] %v193_v6 }
  0x2b   : > { %196 = vst [vmem:[%s162_s26 + $0x1c] sm:$0xf] %v195_v7  ;;  %v197_v8 = vld [vmem:[%s944_s28 + $0x40] sm:$0xf]  ;;  %v199_v9 = vld [vmem:[%s944_s28 + $0x48] sm:$0xf] }
  0x2c   : > { %v201_v10 = vld [vmem:[%s944_s28 + $0x50] sm:$0xf]  ;;  %198 = vst [vmem:[%s162_s26 + $0x20] sm:$0xf] %v197_v8  ;;  %200 = vst [vmem:[%s162_s26 + $0x24] sm:$0xf] %v199_v9 }
  0x2d   : > { %202 = vst [vmem:[%s162_s26 + $0x28] sm:$0xf] %v201_v10  ;;  %v203_v11 = vld [vmem:[%s944_s28 + $0x58] sm:$0xf]  ;;  %v205_v12 = vld [vmem:[%s944_s28 + $0x60] sm:$0xf] }
  0x2e   : > { %v207_v13 = vld [vmem:[%s944_s28 + $0x68] sm:$0xf]  ;;  %204 = vst [vmem:[%s162_s26 + $0x2c] sm:$0xf] %v203_v11  ;;  %206 = vst [vmem:[%s162_s26 + $0x30] sm:$0xf] %v205_v12 }
  0x2f   : > { %208 = vst [vmem:[%s162_s26 + $0x34] sm:$0xf] %v207_v13  ;;  %v209_v14 = vld [vmem:[%s944_s28 + $0x70] sm:$0xf]  ;;  %v211_v15 = vld [vmem:[%s944_s28 + $0x78] sm:$0xf] }
  0x30   : > { %210 = vst [vmem:[%s162_s26 + $0x38] sm:$0xf] %v209_v14  ;;  %212 = vst [vmem:[%s162_s26 + $0x3c] sm:$0xf] %v211_v15 }
  0x31 PF: > { %p567_p0 = scmp.ge.s32.totalorder %s821_s21, 1  ;;  %p273_p1 = scmp.lt.s32.totalorder %s821_s21, 5 }
  0x33   : > { %p274_p2 = pnand %p567_p0, %p273_p1 }
  0x34   : > { %p310_p3 = scmp.lt.s32.totalorder (!%p274_p2), %s805_s17, 1  ;;  %s1049_s0 = sld [smem:[#allocation6_spill]] (!%p274_p2) }
  0x35   : > { %277 = sbr.rel (%p274_p2) target bundleno = 440 (0x1b8), region = 69  ;;  %s280_s10 = sand.u32 (!%p274_p2), 1, %s797_s15  }
  0x36   : > { %s568_s11 = sshll.u32 (!%p274_p2), %s280_s10, 6  ;;  %s307_s15 = sand.u32 (!%p274_p2), 1, %s789_s13  }
  0x37   : > { %s282_s22 = scalar_lea.vmem (!%p274_p2), [#allocation2], %s568_s11  ;;  %p314_p4 = scmp.lt.s32.totalorder (!%p274_p2), %s809_s18, 1 }
  0x38   : > { %s569_s23 = sshll.u32 (!%p274_p2), %s307_s15, 3  ;;  %s581_s26 = sshll.u32 (!%p274_p2), %s805_s17, 1 }
  0x39   : > { %s458_s5 = sadd.s32 (!%p274_p2), %s809_s18, %s581_s26  ;;  %s309_s10 = scalar_lea.vmem (!%p274_p2), [#allocation3], %s569_s23 }
  0x3a   : > { %v823_v16 = vmov 0.0   ;;  %s311_s27 = scalar_select %p310_p3, %s805_s17, 1  ;;  %v703_v19 = vld [vmem:[%s282_s22 + $0x38] sm:$0xff]   ;;  %v704_v20 = vld [vmem:[%s282_s22 + $0x30] sm:$0xff]   ;;  %v705_v21 = vld [vmem:[%s282_s22 + $0x28] sm:$0xff]   ;;  %vm824_vm0 = vmmov 0  }
  0x3b   : > { %594 = vmatprep.subr.bf16.mxu0 %v823_v16  ;;  %v706_v22 = vld [vmem:[%s282_s22 + $0x20] sm:$0xff]   ;;  %v707_v23 = vld [vmem:[%s282_s22 + $0x18] sm:$0xff]   ;;  %610 = vmatprep.mubr.msk.bf16.mxu0 %vm824_vm0, %v823_v16  ;;  %v708_v24 = vld [vmem:[%s282_s22 + $0x10] sm:$0xff]   ;;  %s315_s28 = scalar_select %p314_p4, %s809_s18, 1 }
  0x3c   : > { %s570_s29 = sshll.u32 %s311_s27, 3  ;;  %595 = vmatpush3.bf16.msra.mxu0 %v703_v19  ;;  %v709_v25 = vld [vmem:[%s282_s22 + $0x8] sm:$0xff]   ;;  %v710_v26 = vld [vmem:[%s282_s22] sm:$0xff]   ;;  %s462_s11 = sshll.u32 %s309_s10, 4  ;;  %s983_s11 = int_to_ptr.vmem [resolvable:$true] %s462_s11 }
  0x3d   : > { %s313_s9 = scalar_lea.vmem %s1049_s0, %s570_s29  ;;  %596 = vmatprep.subr.bf16.mxu0 %v823_v16  ;;  %s316_s4 = scalar_lea.vmem %s1041_s2, %s315_s28 }
  0x3e   : > { %v318_v17 = vld [vmem:[%s313_s9] sm:$0xff]  ;;  %s582_s9 = sshll.u32 %s458_s5, 7  ;;  %s447_s17 = scalar_lea.sflag [#allocation4], %s307_s15 }
  0x3f   : > { %319 = vadd.xlane.f32.xlu0 %v318_v17  ;;  %v321_v18 = vmul.f32 %v318_v17, %v318_v17  ;;  %v571_v39 = vld [vmem:[%s316_s4] ss:$0 sm:$0xff]  ;;  %s981_s1 = scalar_lea.hbm %s1042_s3, %s582_s9  ;;  %s713_s18 = scalar_lea.vmem %s983_s11, 128 }
  0x40   : > { %597 = vmatpush3.bf16.msra.mxu0 %v704_v20  ;;  %p714_p5 = scmp.ne.s32.totalorder %s983_s11, %s713_s18  ;;  %s825_s23 = smov [#allocation3]  }
  0x41   : > { %598 = vmatprep.subr.bf16.mxu0 %v823_v16  ;;  %s717_s28 = sshll.u32 %s825_s23, 4  ;;  %s718_s28 = int_to_ptr.vmem [resolvable:$false] %s717_s28 }
  0x42   : > { %p715_p6 = pnand %p714_p5, %p918_p7  ;;  %s719_s0 = scalar_lea.vmem %s718_s28, 256 }
  0x43   : > { %322 = vadd.xlane.f32.xlu0 %v321_v18  ;;  %p720_p9 = scmp.lt.s32.totalorder %s983_s11, %s718_s28  ;;  %p721_p10 = scmp.lt.s32.totalorder %s719_s0, %s713_s18 }
  0x44   : > { %599 = vmatpush3.bf16.msra.mxu0 %v705_v21  ;;  %p716_p8 = pneg %p715_p6 }
  0x45   : > { %600 = vmatprep.subr.bf16.mxu0 %v823_v16  ;;  %p722_p11 = por %p721_p10, %p720_p9 }
  0x47   : > { %p723_p13 = pnand %p722_p11, %p716_p8 }
  0x48   : > { %601 = vmatpush3.bf16.msra.mxu0 %v706_v22 }
  0x49   : > { %602 = vmatprep.subr.bf16.mxu0 %v823_v16 }
  0x4c   : > { %603 = vmatpush3.bf16.msra.mxu0 %v707_v23 }
  0x4d   : > { %604 = vmatprep.subr.bf16.mxu0 %v823_v16 }
  0x50   : > { %605 = vmatpush3.bf16.msra.mxu0 %v708_v24 }
  0x51   : > { %606 = vmatprep.subr.bf16.mxu0 %v823_v16 }
  0x54   : > { %607 = vmatpush3.bf16.msra.mxu0 %v709_v25 }
  0x55   : > { %608 = vmatprep.subr.bf16.mxu0 %v823_v16 }
  0x58   : > { %609 = vmatpush3.bf16.msra.mxu0 %v710_v26 }
  0xc8   : > { %v320_v27 = vpop.xlane.xlu0 %319 }
  0xc9   : > { %v324_v28 = vmul.f32 0.0078125, %v320_v27 }
  0xcb   : > { %v326_v30 = vmul.f32 %v324_v28, %v324_v28  ;;  %v329_v35 = vsub.f32 %v318_v17, %v324_v28 }
  0xcc   : > { %v323_v29 = vpop.xlane.xlu0 %322 }
  0xcd   : > { %v325_v31 = vmul.f32 0.0078125, %v323_v29 }
  0xcf   : > { %v327_v32 = vsub.f32 %v325_v31, %v326_v30 }
  0xd1   : > { %v328_v33 = vmax.f32 %v327_v32, 0.0 }
  0xd3   : > { %v330_v34 = vadd.f32 1e-05, %v328_v33 }
  0xd5   : > { %711 = vrsqrt.f32 %v330_v34 }
  0xe2   : > { %v712_v36 = vpop.eup %711 }
  0xe3   : > { %v332_v37 = vmul.f32 %v712_v36, %v329_v35 }
  0xe5   : > { %v333_v38 = vpack.c.bf16 %v332_v37, %v332_v37 }
  0xe7   : > { %611 = vmatmul.mubr.bf16.vlgmr.msra.gmra.mxu0 %v333_v38 }
 0x1a7   : > { %v439_v40 = vpop.f32.mrf.mxu0 }
 0x1a8   : > { %v440_v41 = vadd.f32 %v571_v39, %v439_v40 }
 0x1a9   : > { %v612_v42 = vpop.f32.mrf.mxu0 }
 0x1aa   : > { %445 = vst [vmem:[%s309_s10] sm:$0xff] %v440_v41 }
 0x1ab   : > { %v442_v43 = vpop.f32.mrf.mxu0 }
 0x1ac   : > { %726 = shalt.err (!%p723_p13)
}
 0x1ad   : > { %s727_s26 = scalar_lea.hbm %s981_s1, 128  ;;  %s731_s29 = scalar_lea.hbm %s1042_s3, 512 }
 0x1ae   : > { %p728_p0 = scmp.ne.s32.totalorder %s981_s1, %s727_s26  ;;  %p732_p3 = scmp.lt.s32.totalorder %s981_s1, %s1042_s3 }
 0x1af   : > { %p733_p4 = scmp.lt.s32.totalorder %s731_s29, %s727_s26 }
 0x1b0   : > { %p729_p1 = pnand %p728_p0, %p918_p7 }
 0x1b1   : > { %p734_p5 = por %p733_p4, %p732_p3 }
 0x1b2   : > { %p730_p2 = pneg %p729_p1 }
 0x1b4   : > { %p735_p6 = pnand %p734_p5, %p730_p2 }
 0x1b6   : > { %738 = shalt.err (!%p735_p6)
}
 0x1b7   : > { %614 = dma.vmem_to_hbm [thread:$0]  (%p918_p7), %s983_s11, 128, %s981_s1, %s447_s17   ;;  %v613_v44 = vpop.f32.mrf.mxu0 }
 0x1b8 PF: > { %p620_p8 = scmp.ge.s32.totalorder %s821_s21, 2  ;;  %s474_s9 = sand.u32 1, %s785_s12  }
 0x1b9   : > { %s475_s10 = scalar_lea.sflag [#allocation4], %s474_s9 }
 0x1ba   : > { %p617_p9 = pnand %p620_p8, %p926_p12 }
 0x1bc   : > { %p618_p10 = pneg %p617_p9 }
 0x1be   : > { %780 = dma.done.wait (%p618_p10), %s475_s10, 128  }
 0x1bf   : > { %782 = vsyncadd (%p618_p10), %s475_s10, 4294967168  ;;  %s16_s21 = sadd.s32 1, %s821_s21   ;;  %s1050_s12 = smov %s789_s13 }
 0x1c0   : > { %p13_p11 = scmp.ge.s32.totalorder %s16_s21, 6   ;;  %s1051_s13 = smov %s793_s14 }
 0x1c1   : > { %s1052_s14 = smov %s934_s8  ;;  %s1053_s15 = smov %s801_s16 }
 0x1c2   : > { %s1054_s16 = smov %s931_s7  ;;  %s1055_s17 = smov %s813_s19 }
 0x1c3   : > { %s1056_s18 = smov %s817_s20  ;;  %s1057_s19 = smov %s1060_s24 }
 0x1c4   : > { %s1058_s20 = smov %s1064_s25  ;;  %15 = sbr.rel (!%p13_p11) target bundleno = 9 (0x9), region = 119 }
 0x1c9   :  { %480 = vsyncpa [#allocation4], 1 }
 0x1ca   :  { %482 = vsyncpa [#allocation4 + $0x1], 1 }

</bundles_post_ra>
